<compile_context>
chip_gen: v6e
topology: v6e:2x2x1
jax: 0.10.0
libtpu: 0.0.40
codegen_flags: <defaults>
</compile_context>

<pallas_src>
import functools

import jax
import jax.numpy as jnp
from jax.experimental import pallas as pl
from jax.experimental.pallas import tpu as pltpu


def _dilation_box_kernel(x_ref, o_ref, pad_ref, *, s, p_lo, p_hi, norm, step,
                         binarize):
    # x_ref:   VMEM (bb, C, H, W)   float32 image block
    # o_ref:   VMEM (bb, O, Ho, Wo) int8 (binarized 0/1) or float32
    # pad_ref: VMEM (bb, Hp, Wp)    float32 scratch for the zero-padded plane
    bb, C, H, W = x_ref.shape
    O, Ho, Wo = o_ref.shape[1], o_ref.shape[2], o_ref.shape[3]

    x = x_ref[...]                              # (bb, C, H, W) f32

    # Channel sum first: uniform weights => one plane serves every (o, c) pair.
    xc = x[:, 0]
    for c in range(1, C):
        xc = xc + x[:, c]                       # (bb, H, W)

    # Zero-pad inside VMEM (constant padding_value=0), no host-side pad pass.
    pad_ref[...] = jnp.zeros_like(pad_ref)
    pad_ref[:, p_lo:p_lo + H, p_lo:p_lo + W] = xc
    xp = pad_ref[...]                           # (bb, Hp, Wp)

    # Separable box filter: s horizontal taps, then s vertical taps.
    h = xp[:, :, 0:Wo]
    for k in range(1, s):
        h = h + xp[:, :, k:k + Wo]              # (bb, Hp, Wo)
    acc = h[:, 0:Ho, :]
    for k in range(1, s):
        acc = acc + h[:, k:k + Ho, :]           # (bb, Ho, Wo)

    if norm != 1.0:
        acc = acc * jnp.float32(norm)           # single 1/s^2 scale

    if binarize:
        res = (acc > jnp.float32(step)).astype(o_ref.dtype)   # int8 0/1
    else:
        res = acc.astype(o_ref.dtype)

    # All O output channels are identical: compute once, broadcast on store.
    o_ref[...] = jnp.broadcast_to(res[:, None], (bb, O, Ho, Wo))


def dilation_kernel_forward(img, size=3, *, normalize=True, binarize=True,
                            binarization_step=0.0):
    """Replicates DilationKernel(size).forward(img) for NCHW input."""
    img = jnp.asarray(img)
    if img.ndim == 2:
        img = img[None]
    if img.ndim == 3:
        img = img[None]
    B, C, H, W = img.shape
    s = int(size)

    # torch .expand semantics: out_channels == B when B != 1, else 1.
    O = B if B != 1 else 1

    # ConvolutionKernel default "same-ish" constant-zero padding.
    p_lo = s // 2 - 1 + s % 2
    p_hi = s // 2
    Hp, Wp = H + p_lo + p_hi, W + p_lo + p_hi
    Ho, Wo = Hp - s + 1, Wp - s + 1              # stride=1, dilation=1

    x = img.astype(jnp.float32)                  # matches img.float()

    out_dtype = jnp.int8 if binarize else jnp.float32
    out_itemsize = jnp.dtype(out_dtype).itemsize

    # Largest batch-block dividing B whose double-buffered working set stays
    # small (amortizes ~0.35us/step grid overhead; safe for v7x's 64 MiB VMEM).
    budget = 4 << 20
    bb = 1
    for cand in range(B, 0, -1):
        if B % cand:
            continue
        in_b = cand * C * H * W * 4
        out_b = cand * O * Ho * Wo * out_itemsize
        pad_b = cand * Hp * Wp * 4
        if 2 * (in_b + out_b) + pad_b <= budget:
            bb = cand
            break

    kernel_fn = functools.partial(
        _dilation_box_kernel,
        s=s, p_lo=p_lo, p_hi=p_hi,
        norm=(1.0 / (s * s)) if normalize else 1.0,
        step=float(binarization_step),
        binarize=binarize)

    out = pl.pallas_call(
        kernel_fn,
        out_shape=jax.ShapeDtypeStruct((B, O, Ho, Wo), out_dtype),
        grid=(B // bb,),
        in_specs=[pl.BlockSpec((bb, C, H, W), lambda i: (i, 0, 0, 0))],
        out_specs=pl.BlockSpec((bb, O, Ho, Wo), lambda i: (i, 0, 0, 0)),
        scratch_shapes=[pltpu.VMEM((bb, Hp, Wp), jnp.float32)],
        compiler_params=pltpu.CompilerParams(
            dimension_semantics=("parallel",)),
    )(x)

    if binarize:
        out = out.astype(jnp.bool_)              # PyTorch returns a bool tensor
    return out


def _reference(img, size=3, normalize=True, binarize=True, step=0.0):
    """Pure-JAX reference of the same forward pass (for validation)."""
    B, C, H, W = img.shape
    s = size
    k = jnp.ones((s, s), jnp.float32) / (s * s if normalize else 1.0)
    k = k[None, None]
    if C != k.shape[1]:
        k = jnp.broadcast_to(k, (k.shape[0], C, s, s))
    if B != k.shape[0]:
        k = jnp.broadcast_to(k, (B,) + k.shape[1:])
    p_lo, p_hi = s // 2 - 1 + s % 2, s // 2
    xpad = jnp.pad(img.astype(jnp.float32),
                   ((0, 0), (0, 0), (p_lo, p_hi), (p_lo, p_hi)))
    out = jax.lax.conv_general_dilated(
        xpad, k, window_strides=(1, 1), padding="VALID",
        dimension_numbers=("NCHW", "OIHW", "NCHW"))
    return out > step if binarize else out


if __name__ == "__main__":
    key = jax.random.PRNGKey(0)
    # Sparse [0,1] "binary-ish" image, as DilationKernel expects.
    B, C, H, W = 2, 4, 16, 16
    x = (jax.random.uniform(key, (B, C, H, W)) > 0.9).astype(jnp.float32)

    y = dilation_kernel_forward(x, size=3)
    y = jax.block_until_ready(y)

    y_ref = _reference(x, size=3)
    assert y.shape == (B, B, H, W), y.shape      # out_channels == batch (torch expand)
    assert y.dtype == jnp.bool_, y.dtype
    assert bool(jnp.array_equal(y, y_ref)), "mismatch vs pure-JAX reference"

    print("KERNEL_OK")
</pallas_src>

<mosaic_0001>
module attributes {stable_mosaic.version = 11 : i64} {
  func.func @_dilation_box_kernel(%arg0: i32, %arg1: memref<2x4x16x16xf32, #tpu.memory_space<vmem>>, %arg2: memref<2x2x16x16xi8, #tpu.memory_space<vmem>>, %arg3: memref<2x18x18xf32, #tpu.memory_space<vmem>>) attributes {dimension_semantics = [#tpu.dimension_semantics<parallel>], iteration_bounds = array<i64: 1>, scalar_prefetch = 0 : i64, scratch_operands = 1 : i64, tpu.core_type = #tpu.core_type<tc>, window_params = [{transform_indices = @transform_0, window_bounds = array<i64: 2, 4, 16, 16>}, {transform_indices = @transform_1, window_bounds = array<i64: 2, 2, 16, 16>}]} {
    %c0 = arith.constant 0 : index
    %c0_0 = arith.constant 0 : index
    %c0_1 = arith.constant 0 : index
    %c0_2 = arith.constant 0 : index
    %0 = vector.load %arg1[%c0, %c0_0, %c0_1, %c0_2] : memref<2x4x16x16xf32, #tpu.memory_space<vmem>>, vector<2x4x16x16xf32>
    %1 = vector.extract_strided_slice %0 {offsets = [0, 0, 0, 0], sizes = [2, 1, 16, 16], strides = [1, 1, 1, 1]} : vector<2x4x16x16xf32> to vector<2x1x16x16xf32>
    %2 = vector.shape_cast %1 : vector<2x1x16x16xf32> to vector<2x16x16xf32>
    %3 = vector.extract_strided_slice %0 {offsets = [0, 1, 0, 0], sizes = [2, 1, 16, 16], strides = [1, 1, 1, 1]} : vector<2x4x16x16xf32> to vector<2x1x16x16xf32>
    %4 = vector.shape_cast %3 : vector<2x1x16x16xf32> to vector<2x16x16xf32>
    %5 = arith.addf %2, %4 : vector<2x16x16xf32>
    %6 = vector.extract_strided_slice %0 {offsets = [0, 2, 0, 0], sizes = [2, 1, 16, 16], strides = [1, 1, 1, 1]} : vector<2x4x16x16xf32> to vector<2x1x16x16xf32>
    %7 = vector.shape_cast %6 : vector<2x1x16x16xf32> to vector<2x16x16xf32>
    %8 = arith.addf %5, %7 : vector<2x16x16xf32>
    %9 = vector.extract_strided_slice %0 {offsets = [0, 3, 0, 0], sizes = [2, 1, 16, 16], strides = [1, 1, 1, 1]} : vector<2x4x16x16xf32> to vector<2x1x16x16xf32>
    %10 = vector.shape_cast %9 : vector<2x1x16x16xf32> to vector<2x16x16xf32>
    %11 = arith.addf %8, %10 : vector<2x16x16xf32>
    %cst = arith.constant 0.000000e+00 : f32
    %12 = vector.broadcast %cst : f32 to vector<2x18x18xf32>
    %c0_3 = arith.constant 0 : index
    %c0_4 = arith.constant 0 : index
    %c0_5 = arith.constant 0 : index
    %13 = vector.load %arg3[%c0_3, %c0_4, %c0_5] : memref<2x18x18xf32, #tpu.memory_space<vmem>>, vector<2x18x18xf32>
    tpu.vector_store %arg3[%c0_3, %c0_4, %c0_5], %12 {strides = array<i32>} : memref<2x18x18xf32, #tpu.memory_space<vmem>>, vector<2x18x18xf32>,
    %c0_6 = arith.constant 0 : index
    %c1 = arith.constant 1 : index
    %c1_7 = arith.constant 1 : index
    %14 = vector.load %arg3[%c0_6, %c1, %c1_7] : memref<2x18x18xf32, #tpu.memory_space<vmem>>, vector<2x16x16xf32>
    tpu.vector_store %arg3[%c0_6, %c1, %c1_7], %11 {strides = array<i32>} : memref<2x18x18xf32, #tpu.memory_space<vmem>>, vector<2x16x16xf32>,
    %c0_8 = arith.constant 0 : index
    %c0_9 = arith.constant 0 : index
    %c0_10 = arith.constant 0 : index
    %15 = vector.load %arg3[%c0_8, %c0_9, %c0_10] : memref<2x18x18xf32, #tpu.memory_space<vmem>>, vector<2x18x18xf32>
    %16 = vector.extract_strided_slice %15 {offsets = [0, 0, 0], sizes = [2, 18, 16], strides = [1, 1, 1]} : vector<2x18x18xf32> to vector<2x18x16xf32>
    %17 = vector.extract_strided_slice %15 {offsets = [0, 0, 1], sizes = [2, 18, 16], strides = [1, 1, 1]} : vector<2x18x18xf32> to vector<2x18x16xf32>
    %18 = arith.addf %16, %17 : vector<2x18x16xf32>
    %19 = vector.extract_strided_slice %15 {offsets = [0, 0, 2], sizes = [2, 18, 16], strides = [1, 1, 1]} : vector<2x18x18xf32> to vector<2x18x16xf32>
    %20 = arith.addf %18, %19 : vector<2x18x16xf32>
    %21 = vector.extract_strided_slice %20 {offsets = [0, 0, 0], sizes = [2, 16, 16], strides = [1, 1, 1]} : vector<2x18x16xf32> to vector<2x16x16xf32>
    %22 = vector.extract_strided_slice %20 {offsets = [0, 1, 0], sizes = [2, 16, 16], strides = [1, 1, 1]} : vector<2x18x16xf32> to vector<2x16x16xf32>
    %23 = arith.addf %21, %22 : vector<2x16x16xf32>
    %24 = vector.extract_strided_slice %20 {offsets = [0, 2, 0], sizes = [2, 16, 16], strides = [1, 1, 1]} : vector<2x18x16xf32> to vector<2x16x16xf32>
    %25 = arith.addf %23, %24 : vector<2x16x16xf32>
    %cst_11 = arith.constant 0.111111112 : f32
    %26 = vector.broadcast %cst_11 : f32 to vector<2x16x16xf32>
    %27 = arith.mulf %25, %26 : vector<2x16x16xf32>
    %cst_12 = arith.constant 0.000000e+00 : f32
    %28 = vector.broadcast %cst_12 : f32 to vector<2x16x16xf32>
    %29 = arith.cmpf ogt, %27, %28 : vector<2x16x16xf32>
    %30 = arith.extui %29 : vector<2x16x16xi1> to vector<2x16x16xi8>
    %31 = vector.shape_cast %30 : vector<2x16x16xi8> to vector<2x1x16x16xi8>
    %32 = vector.shape_cast %31 : vector<2x1x16x16xi8> to vector<2x1x16x16xi8>
    %33 = vector.broadcast %32 : vector<2x1x16x16xi8> to vector<2x2x16x16xi8>
    %c0_13 = arith.constant 0 : index
    %c0_14 = arith.constant 0 : index
    %c0_15 = arith.constant 0 : index
    %c0_16 = arith.constant 0 : index
    %34 = vector.load %arg2[%c0_13, %c0_14, %c0_15, %c0_16] : memref<2x2x16x16xi8, #tpu.memory_space<vmem>>, vector<2x2x16x16xi8>
    tpu.vector_store %arg2[%c0_13, %c0_14, %c0_15, %c0_16], %33 {strides = array<i32>} : memref<2x2x16x16xi8, #tpu.memory_space<vmem>>, vector<2x2x16x16xi8>,
    return
  }
  func.func @transform_0(%arg0: i32) -> (i32, i32, i32, i32) {
    %c0_i32 = arith.constant 0 : i32
    %c0_i32_0 = arith.constant 0 : i32
    %c0_i32_1 = arith.constant 0 : i32
    %c0_i32_2 = arith.constant 0 : i32
    return %arg0, %c0_i32, %c0_i32_0, %c0_i32_1 : i32, i32, i32, i32
  }
  func.func @transform_1(%arg0: i32) -> (i32, i32, i32, i32) {
    %c0_i32 = arith.constant 0 : i32
    %c0_i32_0 = arith.constant 0 : i32
    %c0_i32_1 = arith.constant 0 : i32
    %c0_i32_2 = arith.constant 0 : i32
    return %arg0, %c0_i32, %c0_i32_0, %c0_i32_1 : i32, i32, i32, i32
  }
}

</mosaic_0001>

<bundles_post_ra>
// kernel: tpu_custom_call.1
= control target key start
LH: loop header
LB: loop body
LE: loop exit
PB: predicated region body
PF: predicated region fallthrough
CT: control target
= control target key end

     0   :  { %6 = vsyncpa [#allocation4], 0  ;;  %s336_s0 = inlined_call_operand.hbm [shape: f32[2,4,16,16], index: 0, kind: input, shape index: {}]   ;;  %s337_s1 = inlined_call_operand.hbm [shape: s8[2,2,16,16], index: 1, kind: output, shape index: {}]  }
   0x1   :  { %7 = vsyncpa [#allocation5], 0  ;;  %s293_s6 = smov [#allocation3]  }
   0x2   :  { %s13_s7 = sshll.u32 %s293_s6, 4  ;;  %s14_s7 = int_to_ptr.vmem [resolvable:$true] %s13_s7 }
   0x3   :  { %s257_s8 = scalar_lea.vmem %s14_s7, 2048  ;;  %p262_p1 = scmp.lt.s32.totalorder %s14_s7, %s14_s7 }
   0x4   :  { %p258_p0 = scmp.ne.s32.totalorder %s14_s7, %s257_s8  ;;  %p263_p2 = scmp.lt.s32.totalorder %s257_s8, %s257_s8 }
   0x6   :  { %p264_p3 = por %p263_p2, %p262_p1 }
   0x8   :  { %p265_p4 = pnand %p264_p3, %p258_p0 }
   0xa   :  { %268 = shalt.err (!%p265_p4)
}
   0xb   :  { %s294_s9 = smov 128   ;;  %s295_s10 = smov 8  }
   0xc   :  { %19 = dma.hbm_to_vmem [thread:$0]  %s336_s0, 2048, %s14_s7, [#allocation4], %s294_s9, %s294_s9, %s295_s10  }
   0xd   :  { %289 = dma.done.wait [#allocation4], 2048  }
   0xe   :  { %290 = vsyncadd [#allocation4], 4294965248  ;;  %vm53_vm0 = vcmask 146432   ;;  %v296_v0 = vmov 0.0   ;;  %vm56_vm1 = vcmask 140288   ;;  %v25_v1 = vld [vmem:[#allocation3] sm:$0xff] }
   0xf   :  { %54 = vst.msk [vmem:[#allocation2] sm:$0xff] %vm53_vm0, %v296_v0  ;;  %55 = vst.msk [vmem:[#allocation2 + $0x8] sm:$0xff] %vm53_vm0, %v296_v0  ;;  %v27_v2 = vld [vmem:[#allocation3 + $0x10] sm:$0xff]  ;;  %v29_v3 = vld [vmem:[#allocation3 + $0x20] sm:$0xff]  ;;  %s297_s0 = smov 1   ;;  %vm77_vm2 = vcmask 138248  }
  0x10   :  { %58 = vst.msk [vmem:[#allocation2 + $0x18] sm:$0xff] %vm53_vm0, %v296_v0  ;;  %59 = vst.msk [vmem:[#allocation2 + $0x20] sm:$0xff] %vm53_vm0, %v296_v0  ;;  %v41_v4 = vadd.f32 %v27_v2, %v25_v1  ;;  %v33_v5 = vld [vmem:[#allocation3 + $0x40] sm:$0xff]  ;;  %v35_v6 = vld [vmem:[#allocation3 + $0x50] sm:$0xff]  ;;  %s298_s13 = smov 127   ;;  %s299_s14 = smov 126  }
  0x11   :  { %57 = vst.msk [vmem:[#allocation2 + $0x10] sm:$0x3] %vm56_vm1, %v296_v0  ;;  %60 = vst.msk [vmem:[#allocation2 + $0x28] sm:$0x3] %vm56_vm1, %v296_v0  ;;  %v31_v7 = vld [vmem:[#allocation3 + $0x30] sm:$0xff]  ;;  %v37_v8 = vld [vmem:[#allocation3 + $0x60] sm:$0xff]  ;;  %v43_v9 = vadd.f32 %v35_v6, %v33_v5 }
  0x12   :  { %v26_v10 = vld [vmem:[#allocation3 + $0x8] sm:$0xff]  ;;  %v45_v11 = vadd.f32 %v41_v4, %v29_v3  ;;  %v39_v12 = vld [vmem:[#allocation3 + $0x70] sm:$0xff]  ;;  %v28_v13 = vld [vmem:[#allocation3 + $0x18] sm:$0xff]  ;;  %vm148_vm3 = vcmask 1046528   ;;  %vm167_vm4 = vcmask 1045504   ;;  %vm212_vm9 = vcmask 123904  }
  0x13   :  { %v30_v14 = vld [vmem:[#allocation3 + $0x28] sm:$0xff]  ;;  %v47_v15 = vadd.f32 %v43_v9, %v37_v8  ;;  %v42_v16 = vadd.f32 %v28_v13, %v26_v10  ;;  %v36_v18 = vld [vmem:[#allocation3 + $0x58] sm:$0xff]  ;;  %s301_s15 = smov [#allocation6]  }
  0x14   :  { %v34_v17 = vld [vmem:[#allocation3 + $0x48] sm:$0xff]  ;;  %v49_v20 = vadd.f32 %v45_v11, %v31_v7  ;;  %v32_v21 = vld [vmem:[#allocation3 + $0x38] sm:$0xff]  ;;  %s226_s16 = sshll.u32 %s301_s15, 4  ;;  %s227_s16 = int_to_ptr.vmem [resolvable:$true] %s226_s16 }
  0x15   :  { %v38_v19 = vld [vmem:[#allocation3 + $0x68] sm:$0xff]  ;;  %v44_v22 = vadd.f32 %v36_v18, %v34_v17  ;;  %v51_v23 = vadd.f32 %v47_v15, %v39_v12  ;;  %v46_v24 = vadd.f32 %v42_v16, %v30_v14  ;;  %v40_v25 = vld [vmem:[#allocation3 + $0x78] sm:$0xff]  ;;  %s269_s17 = scalar_lea.vmem %s227_s16, 256  ;;  %p274_p6 = scmp.lt.s32.totalorder %s227_s16, %s227_s16 }
  0x16   :  { %65 = vrot.lane.b32.xlu0 %v49_v20, %s297_s0  ;;  %p270_p5 = scmp.ne.s32.totalorder %s227_s16, %s269_s17  ;;  %p275_p7 = scmp.lt.s32.totalorder %s269_s17, %s269_s17 }
  0x17   :  { %v48_v26 = vadd.f32 %v44_v22, %v38_v19  ;;  %69 = vrot.lane.b32.xlu1 %v51_v23, %s297_s0  ;;  %v50_v27 = vadd.f32 %v46_v24, %v32_v21 }
  0x18   :  { %p276_p8 = por %p275_p7, %p274_p6 }
  0x19   :  { %v52_v28 = vadd.f32 %v48_v26, %v40_v25 }
  0x1a   :  { %67 = vrot.lane.b32.xlu0 %v50_v27, %s297_s0  ;;  %v300_v27 = vmov 0   ;;  %p277_p9 = pnand %p276_p8, %p270_p5 }
  0x1b   :  { %71 = vrot.lane.b32.xlu1 %v52_v28, %s297_s0 }
  0x88   :  { %v66_v29 = vpop.permute.xlu0 %65 }
  0x89   :  { %78 = vst.msk [vmem:[#allocation2 + $0x1] sm:$0xff] %vm77_vm2, %v66_v29  ;;  %v70_v30 = vpop.permute.xlu1 %69 }
  0x8a   :  { %80 = vst.msk [vmem:[#allocation2 + $0x19] sm:$0xff] %vm77_vm2, %v70_v30 }
  0x8c   :  { %v68_v31 = vpop.permute.xlu0 %67 }
  0x8d   :  { %79 = vst.msk [vmem:[#allocation2 + $0x9] sm:$0xff] %vm77_vm2, %v68_v31  ;;  %v72_v32 = vpop.permute.xlu1 %71 }
  0x8e   :  { %81 = vst.msk [vmem:[#allocation2 + $0x21] sm:$0xff] %vm77_vm2, %v72_v32 }
  0x90   :  { %v82_v33 = vld [vmem:[#allocation2] sm:$0xff] }
  0x91   :  { %94 = vrot.lane.b32.xlu0 %v82_v33, %s298_s13  ;;  %v85_v37 = vld [vmem:[#allocation2 + $0x18] sm:$0xff] }
  0x94   :  { %v84_v34 = vld [vmem:[#allocation2 + $0x10] sm:$0x3]  ;;  %v83_v35 = vld [vmem:[#allocation2 + $0x8] sm:$0xff] }
  0x95   :  { %98 = vrot.lane.b32.xlu0 %v84_v34, %s298_s13  ;;  %96 = vrot.lane.b32.xlu1 %v83_v35, %s298_s13  ;;  %v86_v36 = vld [vmem:[#allocation2 + $0x20] sm:$0xff]  ;;  %v87_v38 = vld [vmem:[#allocation2 + $0x28] sm:$0x3] }
  0x99   :  { %102 = vrot.lane.b32.xlu0 %v86_v36, %s298_s13  ;;  %100 = vrot.lane.b32.xlu1 %v85_v37, %s298_s13 }
  0x9d   :  { %118 = vrot.lane.b32.xlu0 %v82_v33, %s299_s14  ;;  %104 = vrot.lane.b32.xlu1 %v87_v38, %s298_s13 }
  0xa1   :  { %122 = vrot.lane.b32.xlu0 %v84_v34, %s299_s14  ;;  %120 = vrot.lane.b32.xlu1 %v83_v35, %s299_s14 }
  0xa5   :  { %126 = vrot.lane.b32.xlu0 %v86_v36, %s299_s14  ;;  %124 = vrot.lane.b32.xlu1 %v85_v37, %s299_s14 }
  0xa9   :  { %128 = vrot.lane.b32.xlu1 %v87_v38, %s299_s14 }
 0x103   :  { %v95_v39 = vpop.permute.xlu0 %94 }
 0x104   :  { %v112_v44 = vadd.f32 %v95_v39, %v82_v33 }
 0x107   :  { %v97_v40 = vpop.permute.xlu1 %96  ;;  %v99_v41 = vpop.permute.xlu0 %98 }
 0x108   :  { %v113_v48 = vadd.f32 %v97_v40, %v83_v35  ;;  %v114_v49 = vadd.f32 %v99_v41, %v84_v34 }
 0x10b   :  { %v101_v42 = vpop.permute.xlu1 %100  ;;  %v103_v43 = vpop.permute.xlu0 %102 }
 0x10c   :  { %v115_v59 = vadd.f32 %v101_v42, %v85_v37  ;;  %v116_v60 = vadd.f32 %v103_v43, %v86_v36 }
 0x10f   :  { %v105_v45 = vpop.permute.xlu1 %104  ;;  %v119_v46 = vpop.permute.xlu0 %118 }
 0x110   :  { %v136_v47 = vadd.f32 %v119_v46, %v112_v44  ;;  %v117_v6 = vadd.f32 %v105_v45, %v87_v38 }
 0x112   :  { %v149_v54 = vrot.slane %v136_v47, 1  ;;  %v168_v63 = vrot.slane %v136_v47, 2 }
 0x113   :  { %v121_v50 = vpop.permute.xlu1 %120  ;;  %v123_v51 = vpop.permute.xlu0 %122 }
 0x114   :  { %v137_v52 = vadd.f32 %v121_v50, %v113_v48  ;;  %v138_v53 = vadd.f32 %v123_v51, %v114_v49 }
 0x116   :  { %v150_v55 = vrot.slane %v137_v52, 1  ;;  %v169_v56 = vrot.slane %v137_v52, 2  ;;  %v152_v57 = vrot.slane %v138_v53, 1  ;;  %v171_v58 = vrot.slane %v138_v53, 2 }
 0x117   :  { %v125_v61 = vpop.permute.xlu1 %124  ;;  %v127_v62 = vpop.permute.xlu0 %126 }
 0x118   :  { %v151_v0 = vsel %vm148_vm3, %v149_v54, %v150_v55  ;;  %v153_v1 = vsel %vm148_vm3, %v150_v55, %v152_v57  ;;  %v139_v4 = vadd.f32 %v125_v61, %v115_v59  ;;  %v140_v5 = vadd.f32 %v127_v62, %v116_v60 }
 0x119   :  { %v163_v2 = vadd.f32 %v151_v0, %v136_v47  ;;  %v164_v3 = vadd.f32 %v153_v1, %v137_v52  ;;  %v170_v7 = vsel %vm167_vm4, %v168_v63, %v169_v56  ;;  %v172_v8 = vsel %vm167_vm4, %v169_v56, %v171_v58 }
 0x11a   :  { %v154_v11 = vrot.slane %v139_v4, 1  ;;  %v173_v13 = vrot.slane %v139_v4, 2  ;;  %v155_v14 = vrot.slane %v140_v5, 1  ;;  %v174_v15 = vrot.slane %v140_v5, 2 }
 0x11b   :  { %v182_v9 = vadd.f32 %v170_v7, %v163_v2  ;;  %v183_v10 = vadd.f32 %v172_v8, %v164_v3  ;;  %v129_v12 = vpop.permute.xlu1 %128 }
 0x11c   :  { %v141_v16 = vadd.f32 %v129_v12, %v117_v6  ;;  %v156_v19 = vsel %vm148_vm3, %v154_v11, %v155_v14  ;;  %v175_v23 = vsel %vm167_vm4, %v173_v13, %v174_v15 }
 0x11d   :  { %v186_v17 = vmul.f32 0.11111111, %v182_v9  ;;  %v187_v18 = vmul.f32 0.11111111, %v183_v10  ;;  %v165_v22 = vadd.f32 %v156_v19, %v139_v4 }
 0x11e   :  { %v157_v20 = vrot.slane %v141_v16, 1  ;;  %v176_v21 = vrot.slane %v141_v16, 2 }
 0x11f   :  { %vm190_vm5 = vcmp.gt.f32.partialorder %v186_v17, 0.0  ;;  %vm191_vm6 = vcmp.gt.f32.partialorder %v187_v18, 0.0  ;;  %v184_v25 = vadd.f32 %v175_v23, %v165_v22 }
 0x120   :  { %vm194_vm7 = vmpackc.low %vm191_vm6, %vm190_vm5  ;;  %v158_v24 = vsel %vm148_vm3, %v155_v14, %v157_v20  ;;  %v177_v29 = vsel %vm167_vm4, %v174_v15, %v176_v21 }
 0x121   :  { %vm195_vm8 = vmpackc.even %vm194_vm7, %vm194_vm7  ;;  %v166_v26 = vadd.f32 %v158_v24, %v140_v5  ;;  %v188_v32 = vmul.f32 0.11111111, %v184_v25 }
 0x122   :  { %v198_v28 = vsel %vm195_vm8, 16843009, %v300_v27 }
 0x123   :  { %v200_v30 = vunpack.c.0.s8 %v198_v28  ;;  %v201_v31 = vunpack.c.1.s8 %v198_v28  ;;  %v185_v33 = vadd.f32 %v177_v29, %v166_v26  ;;  %vm192_vm10 = vcmp.gt.f32.partialorder %v188_v32, 0.0 }
 0x125   :  { %v204_v34 = vpack.c.b16 %v200_v30, %v200_v30  ;;  %v206_v35 = vpack.c.b16 %v201_v31, %v201_v31  ;;  %v189_v36 = vmul.f32 0.11111111, %v185_v33 }
 0x127   :  { %v205_v37 = vpack.c.b8 %v204_v34, %v204_v34  ;;  %v207_v38 = vpack.c.b8 %v206_v35, %v206_v35  ;;  %vm193_vm11 = vcmp.gt.f32.partialorder %v189_v36, 0.0 }
 0x128   :  { %vm196_vm12 = vmpackc.low %vm193_vm11, %vm192_vm10 }
 0x129   :  { %213 = vst.msk [vmem:[#allocation6] sm:$0x3] %vm212_vm9, %v205_v37  ;;  %214 = vst.msk [vmem:[#allocation6 + $0x2] sm:$0x3] %vm212_vm9, %v207_v38 }
 0x12a   :  { %215 = vst.msk [vmem:[#allocation6 + $0x4] sm:$0x3] %vm212_vm9, %v205_v37  ;;  %216 = vst.msk [vmem:[#allocation6 + $0x6] sm:$0x3] %vm212_vm9, %v207_v38 }
 0x12b   :  { %vm197_vm13 = vmpackc.even %vm196_vm12, %vm196_vm12 }
 0x12c   :  { %v199_v39 = vsel %vm197_vm13, 16843009, %v300_v27 }
 0x12d   :  { %v202_v40 = vunpack.c.0.s8 %v199_v39  ;;  %v203_v41 = vunpack.c.1.s8 %v199_v39 }
 0x12f   :  { %v208_v42 = vpack.c.b16 %v202_v40, %v202_v40  ;;  %v210_v43 = vpack.c.b16 %v203_v41, %v203_v41 }
 0x131   :  { %v209_v44 = vpack.c.b8 %v208_v42, %v208_v42  ;;  %v211_v45 = vpack.c.b8 %v210_v43, %v210_v43 }
 0x133   :  { %217 = vst.msk [vmem:[#allocation6 + $0x8] sm:$0x3] %vm212_vm9, %v209_v44  ;;  %218 = vst.msk [vmem:[#allocation6 + $0xa] sm:$0x3] %vm212_vm9, %v211_v45 }
 0x134   :  { %219 = vst.msk [vmem:[#allocation6 + $0xc] sm:$0x3] %vm212_vm9, %v209_v44  ;;  %220 = vst.msk [vmem:[#allocation6 + $0xe] sm:$0x3] %vm212_vm9, %v211_v45 }
 0x135   :  { %280 = shalt.err (!%p277_p9)
}
 0x136   :  { %s302_s18 = smov 32   ;;  %s303_s19 = smov 2  }
 0x137   :  { %232 = dma.vmem_to_hbm [thread:$0]  %s227_s16, 256, %s337_s1, [#allocation5], %s302_s18, %s302_s18, %s303_s19  }
 0x138   :  { %291 = dma.done.wait [#allocation5], 256  }
 0x139   :  { %292 = vsyncadd [#allocation5], 4294967040 }
 0x13a   :  { %236 = vsyncpa [#allocation4], 1 }
 0x13b   :  { %237 = vsyncpa [#allocation5], 1 }

</bundles_post_ra>
